<compile_context>
chip_gen: v6e
topology: v6e:2x2x1
jax: 0.10.0
libtpu: 0.0.40
codegen_flags: <defaults>
</compile_context>

<pallas_src>
import jax
import jax.numpy as jnp
from jax.experimental import pallas as pl
from jax.experimental.pallas import tpu as pltpu
import numpy as np

H1 = 128        # first hidden width (as in the PyTorch model)
H2 = 128        # second hidden width, zero-padded 64 -> 128 (lane-dense)
MAX_TB = 2048   # cap on the streamed batch tile


def _round_up(x, m):
    return ((x + m - 1) // m) * m


# ----------------------------------------------------------------------------
# Kernel: fused 3-layer MLP + tanh head.  One grid step processes a (TB, S)
# batch tile; weights stay VMEM-resident across all grid steps.  Matmuls run
# on the MXU with f32 accumulation; bias/ReLU/tanh epilogue is f32.  The head
# is computed transposed so the output slab is (A_pad, TB): lane-dense stores
# and ~16x less writeback / tanh work than a (TB, 128) padded slab.
# ----------------------------------------------------------------------------
def policy_kernel(x_ref, w1_ref, b1_ref, w2_ref, b2_ref, w3t_ref, b3t_ref,
                  mean_t_ref):
    # Cast to the MXU feed dtype inside the kernel (free on the VPU slot; no
    # separate wrapper-side HBM cast pass).
    x = x_ref[...].astype(w1_ref.dtype)                           # (TB, S)

    h1 = jnp.dot(x, w1_ref[...], preferred_element_type=jnp.float32)
    h1 = jnp.maximum(h1 + b1_ref[...], 0.0)                       # (TB, 128) f32

    h2 = jnp.dot(h1.astype(w2_ref.dtype), w2_ref[...],
                 preferred_element_type=jnp.float32)
    h2 = jnp.maximum(h2 + b2_ref[...], 0.0)                       # (TB, 128) f32

    # Head computed transposed: (A_pad, H2) @ (H2, TB) -> (A_pad, TB), so the
    # batch sits on the 128-lane axis of the small output.  Kept in f32 (MXU
    # has huge slack here; preserves head precision even with bf16 w1/w2).
    h3t = jnp.dot(w3t_ref[...].astype(jnp.float32), h2.T,
                  preferred_element_type=jnp.float32)             # (A_pad, TB)
    mean_t_ref[...] = jnp.tanh(h3t + b3t_ref[...]).astype(mean_t_ref.dtype)


def _pick_tb(batch):
    if batch <= 1024:
        return batch                      # single full-array block (no ragged)
    # Streamed tiles: TB must be a multiple of 128 (lane axis of the output).
    # Aim for >= 2 roughly balanced steps so v7x can split the parallel batch
    # axis across its two TensorCores; cap at MAX_TB (VMEM stays at a few MB).
    return min(MAX_TB, _round_up(pl.cdiv(batch, 2), 128))


def policy_forward(state, params):
    """Returns (action_mean (B, A), action_std (1, A)) — the Normal's params."""
    w1, b1, w2, b2, w3t, b3t, logstd = params
    B, S = state.shape
    A = logstd.shape[1]
    A_pad = w3t.shape[0]

    TB = _pick_tb(B)

    def resident(arr):   # weights/biases: same block every grid step
        return pl.BlockSpec(arr.shape, lambda i: (0, 0))

    mean_t = pl.pallas_call(
        policy_kernel,
        out_shape=jax.ShapeDtypeStruct((A_pad, B), jnp.float32),
        grid_spec=pltpu.PrefetchScalarGridSpec(
            num_scalar_prefetch=0,
            grid=(pl.cdiv(B, TB),),          # ragged last block handled by Pallas
            in_specs=[
                pl.BlockSpec((TB, S), lambda i: (i, 0)),   # streamed state
                resident(w1), resident(b1),
                resident(w2), resident(b2),
                resident(w3t), resident(b3t),
            ],
            out_specs=pl.BlockSpec((A_pad, TB), lambda i: (0, i)),
        ),
        compiler_params=pltpu.CompilerParams(
            dimension_semantics=("parallel",)),
    )(state, w1, b1, w2, b2, w3t, b3t)

    mean = mean_t[:A, :].T                         # (B, A): tiny transpose
    # std is state-independent: computed once, returned un-broadcast (1, A).
    std = jnp.exp(logstd.astype(jnp.float32))
    return mean, std


# ----------------------------------------------------------------------------
# Deterministic parameter construction (mirrors layer_init: orthogonal weight
# with the given gain, constant-zero bias), pre-transposed / zero-padded for
# the kernel.  Zero-padding is a mathematical no-op: padded w2 columns and b2
# entries are zero (so the padded h2 features are zero) and padded head rows
# are sliced off by the wrapper.
# ----------------------------------------------------------------------------
def orthogonal_init(key, out_features, in_features, gain):
    rows, cols = out_features, in_features
    a = jax.random.normal(key, (max(rows, cols), min(rows, cols)),
                          dtype=jnp.float32)
    q, r = jnp.linalg.qr(a)
    q = q * jnp.sign(jnp.diag(r))          # make decomposition unique
    if rows < cols:
        q = q.T
    return (gain * q[:rows, :cols]).astype(jnp.float32)   # (out, in)


def make_params(key, state_dim, action_dim, dtype=jnp.float32):
    """`dtype` (f32 or bf16) applies to the matmul weights; bf16 is valid on
    all TPU generations (v5e MXU takes bf16 natively).  The head matmul runs
    in f32 inside the kernel regardless, so head precision is preserved."""
    k1, k2, k3 = jax.random.split(key, 3)
    sqrt2 = float(np.sqrt(2.0))
    a_pad = max(8, _round_up(action_dim, 8))

    # PyTorch Linear weights are (out, in); transpose for x @ W in the kernel.
    w1 = orthogonal_init(k1, H1, state_dim, sqrt2).T              # (S, 128)
    w2_t = orthogonal_init(k2, 64, H1, sqrt2).T                   # (128, 64)
    w3_oi = orthogonal_init(k3, action_dim, 64, 0.01)             # (A, 64)

    w2 = jnp.zeros((H1, H2), jnp.float32).at[:, :64].set(w2_t)            # (128,128)
    w3t = jnp.zeros((a_pad, H2), jnp.float32).at[:action_dim, :64].set(w3_oi)

    b1 = jnp.zeros((1, H1), jnp.float32)
    b2 = jnp.zeros((1, H2), jnp.float32)
    b3t = jnp.zeros((a_pad, 1), jnp.float32)
    logstd = jnp.zeros((1, action_dim), jnp.float32)              # nn.Parameter

    # Only matmul weights are cast; biases/logstd stay f32 so the elementwise
    # epilogue is f32 on every TPU generation (incl. v5e).
    w1, w2, w3t = (w.astype(dtype) for w in (w1, w2, w3t))
    return (w1, b1, w2, b2, w3t, b3t, logstd)


def reference_forward(state, params, action_dim):
    w1, b1, w2, b2, w3t, b3t, logstd = params
    x = state.astype(jnp.float32)
    h1 = jnp.maximum(x @ w1.astype(jnp.float32) + b1, 0.0)
    h2 = jnp.maximum(h1 @ w2.astype(jnp.float32) + b2, 0.0)
    mean = jnp.tanh(h2 @ w3t.astype(jnp.float32).T + b3t.T)[:, :action_dim]
    std = jnp.exp(logstd)
    return mean, std


if __name__ == "__main__":
    state_dim, action_dim = 16, 4
    key = jax.random.PRNGKey(0)
    k_state, k_params, k_big = jax.random.split(key, 3)

    params = make_params(k_params, state_dim, action_dim, dtype=jnp.float32)

    # Small batch (single env step worth of rows).
    state = jax.random.normal(k_state, (8, state_dim), dtype=jnp.float32)
    mean, std = jax.jit(policy_forward)(state, params)
    jax.block_until_ready((mean, std))

    ref_mean, ref_std = reference_forward(state, params, action_dim)
    np.testing.assert_allclose(np.asarray(mean), np.asarray(ref_mean),
                               rtol=1e-5, atol=1e-5)
    np.testing.assert_allclose(np.asarray(std), np.asarray(ref_std),
                               rtol=1e-6, atol=1e-6)

    # PPO-style batch: exercises streamed tiles (TB=1280, 2 grid steps) and a
    # ragged last block (no wrapper-side padding pass).
    big_state = jax.random.normal(k_big, (2500, state_dim), dtype=jnp.float32)
    mean_b, std_b = jax.jit(policy_forward)(big_state, params)
    jax.block_until_ready((mean_b, std_b))
    ref_mean_b, _ = reference_forward(big_state, params, action_dim)
    np.testing.assert_allclose(np.asarray(mean_b), np.asarray(ref_mean_b),
                               rtol=1e-5, atol=1e-5)

    # bf16-fed MXU variant (valid on v5e/v6e/v7x); looser tolerance.
    params_bf16 = make_params(k_params, state_dim, action_dim,
                              dtype=jnp.bfloat16)
    mean_h, std_h = jax.jit(policy_forward)(state, params_bf16)
    jax.block_until_ready((mean_h, std_h))
    np.testing.assert_allclose(np.asarray(mean_h), np.asarray(ref_mean),
                               rtol=5e-2, atol=5e-2)

    # TODO(synk): torch.distributions.Normal object itself has no Pallas
    # equivalent; the kernel returns the distribution's defining parameters
    # (mean, std), with std left un-broadcast at shape (1, action_dim).
    print("KERNEL_OK")
</pallas_src>

<mosaic_0001>
module attributes {stable_mosaic.version = 11 : i64} {
  func.func @policy_kernel(%arg0: i32, %arg1: memref<8x16xf32, #tpu.memory_space<vmem>>, %arg2: memref<16x128xf32, #tpu.memory_space<vmem>>, %arg3: memref<1x128xf32, #tpu.memory_space<vmem>>, %arg4: memref<128x128xf32, #tpu.memory_space<vmem>>, %arg5: memref<1x128xf32, #tpu.memory_space<vmem>>, %arg6: memref<8x128xf32, #tpu.memory_space<vmem>>, %arg7: memref<8x1xf32, #tpu.memory_space<vmem>>, %arg8: memref<8x8xf32, #tpu.memory_space<vmem>>) attributes {dimension_semantics = [#tpu.dimension_semantics<parallel>], iteration_bounds = array<i64: 1>, scalar_prefetch = 0 : i64, scratch_operands = 0 : i64, tpu.core_type = #tpu.core_type<tc>, window_params = [{transform_indices = @transform_0, window_bounds = array<i64: 8, 16>}, {pipeline_mode = #tpu.pipeline_mode<synchronous>, transform_indices = @transform_1, window_bounds = array<i64: 16, 128>}, {pipeline_mode = #tpu.pipeline_mode<synchronous>, transform_indices = @transform_2, window_bounds = array<i64: 1, 128>}, {pipeline_mode = #tpu.pipeline_mode<synchronous>, transform_indices = @transform_3, window_bounds = array<i64: 128, 128>}, {pipeline_mode = #tpu.pipeline_mode<synchronous>, transform_indices = @transform_4, window_bounds = array<i64: 1, 128>}, {pipeline_mode = #tpu.pipeline_mode<synchronous>, transform_indices = @transform_5, window_bounds = array<i64: 8, 128>}, {pipeline_mode = #tpu.pipeline_mode<synchronous>, transform_indices = @transform_6, window_bounds = array<i64: 8, 1>}, {transform_indices = @transform_7, window_bounds = array<i64: 8, 8>}]} {
    %c0 = arith.constant 0 : index
    %c0_0 = arith.constant 0 : index
    %0 = vector.load %arg1[%c0, %c0_0] : memref<8x16xf32, #tpu.memory_space<vmem>>, vector<8x16xf32>
    %c0_1 = arith.constant 0 : index
    %c0_2 = arith.constant 0 : index
    %1 = vector.load %arg2[%c0_1, %c0_2] : memref<16x128xf32, #tpu.memory_space<vmem>>, vector<16x128xf32>
    %cst = arith.constant dense<0.000000e+00> : vector<8x128xf32>
    %2 = tpu.matmul %0, %1, %cst {dimension_numbers = #tpu.dot_dimension_numbers<[1], [0], [0], [1], [0, 0, 1, 1], [], []>} : vector<8x16xf32>, vector<16x128xf32>, vector<8x128xf32> -> vector<8x128xf32>
    %c0_3 = arith.constant 0 : index
    %c0_4 = arith.constant 0 : index
    %3 = vector.load %arg3[%c0_3, %c0_4] : memref<1x128xf32, #tpu.memory_space<vmem>>, vector<1x128xf32>
    %4 = vector.broadcast %3 : vector<1x128xf32> to vector<8x128xf32>
    %5 = arith.addf %2, %4 : vector<8x128xf32>
    %cst_5 = arith.constant 0.000000e+00 : f32
    %6 = vector.broadcast %cst_5 : f32 to vector<8x128xf32>
    %7 = arith.maximumf %5, %6 : vector<8x128xf32>
    %c0_6 = arith.constant 0 : index
    %c0_7 = arith.constant 0 : index
    %8 = vector.load %arg4[%c0_6, %c0_7] : memref<128x128xf32, #tpu.memory_space<vmem>>, vector<128x128xf32>
    %cst_8 = arith.constant dense<0.000000e+00> : vector<8x128xf32>
    %9 = tpu.matmul %7, %8, %cst_8 {dimension_numbers = #tpu.dot_dimension_numbers<[1], [0], [0], [1], [0, 0, 1, 1], [], []>} : vector<8x128xf32>, vector<128x128xf32>, vector<8x128xf32> -> vector<8x128xf32>
    %c0_9 = arith.constant 0 : index
    %c0_10 = arith.constant 0 : index
    %10 = vector.load %arg5[%c0_9, %c0_10] : memref<1x128xf32, #tpu.memory_space<vmem>>, vector<1x128xf32>
    %11 = vector.broadcast %10 : vector<1x128xf32> to vector<8x128xf32>
    %12 = arith.addf %9, %11 : vector<8x128xf32>
    %cst_11 = arith.constant 0.000000e+00 : f32
    %13 = vector.broadcast %cst_11 : f32 to vector<8x128xf32>
    %14 = arith.maximumf %12, %13 : vector<8x128xf32>
    %c0_12 = arith.constant 0 : index
    %c0_13 = arith.constant 0 : index
    %15 = vector.load %arg6[%c0_12, %c0_13] : memref<8x128xf32, #tpu.memory_space<vmem>>, vector<8x128xf32>
    %16 = tpu.transpose %14, [1, 0] : vector<8x128xf32> -> vector<128x8xf32>
    %cst_14 = arith.constant dense<0.000000e+00> : vector<8x8xf32>
    %17 = tpu.matmul %15, %16, %cst_14 {dimension_numbers = #tpu.dot_dimension_numbers<[1], [0], [0], [1], [0, 0, 1, 1], [], []>} : vector<8x128xf32>, vector<128x8xf32>, vector<8x8xf32> -> vector<8x8xf32>
    %c0_15 = arith.constant 0 : index
    %c0_16 = arith.constant 0 : index
    %18 = vector.load %arg7[%c0_15, %c0_16] : memref<8x1xf32, #tpu.memory_space<vmem>>, vector<8x1xf32>
    %19 = vector.broadcast %18 : vector<8x1xf32> to vector<8x8xf32>
    %20 = arith.addf %17, %19 : vector<8x8xf32>
    %21 = math.tanh %20 : vector<8x8xf32>
    %c0_17 = arith.constant 0 : index
    %c0_18 = arith.constant 0 : index
    %22 = vector.load %arg8[%c0_17, %c0_18] : memref<8x8xf32, #tpu.memory_space<vmem>>, vector<8x8xf32>
    tpu.vector_store %arg8[%c0_17, %c0_18], %21 {strides = array<i32>} : memref<8x8xf32, #tpu.memory_space<vmem>>, vector<8x8xf32>,
    return
  }
  func.func @transform_0(%arg0: i32) -> (i32, i32) {
    %c0_i32 = arith.constant 0 : i32
    %c0_i32_0 = arith.constant 0 : i32
    return %arg0, %c0_i32 : i32, i32
  }
  func.func @transform_1(%arg0: i32) -> (i32, i32) {
    %c0_i32 = arith.constant 0 : i32
    %c0_i32_0 = arith.constant 0 : i32
    %c0_i32_1 = arith.constant 0 : i32
    return %c0_i32, %c0_i32_0 : i32, i32
  }
  func.func @transform_2(%arg0: i32) -> (i32, i32) {
    %c0_i32 = arith.constant 0 : i32
    %c0_i32_0 = arith.constant 0 : i32
    %c0_i32_1 = arith.constant 0 : i32
    return %c0_i32, %c0_i32_0 : i32, i32
  }
  func.func @transform_3(%arg0: i32) -> (i32, i32) {
    %c0_i32 = arith.constant 0 : i32
    %c0_i32_0 = arith.constant 0 : i32
    %c0_i32_1 = arith.constant 0 : i32
    return %c0_i32, %c0_i32_0 : i32, i32
  }
  func.func @transform_4(%arg0: i32) -> (i32, i32) {
    %c0_i32 = arith.constant 0 : i32
    %c0_i32_0 = arith.constant 0 : i32
    %c0_i32_1 = arith.constant 0 : i32
    return %c0_i32, %c0_i32_0 : i32, i32
  }
  func.func @transform_5(%arg0: i32) -> (i32, i32) {
    %c0_i32 = arith.constant 0 : i32
    %c0_i32_0 = arith.constant 0 : i32
    %c0_i32_1 = arith.constant 0 : i32
    return %c0_i32, %c0_i32_0 : i32, i32
  }
  func.func @transform_6(%arg0: i32) -> (i32, i32) {
    %c0_i32 = arith.constant 0 : i32
    %c0_i32_0 = arith.constant 0 : i32
    %c0_i32_1 = arith.constant 0 : i32
    return %c0_i32, %c0_i32_0 : i32, i32
  }
  func.func @transform_7(%arg0: i32) -> (i32, i32) {
    %c0_i32 = arith.constant 0 : i32
    %c0_i32_0 = arith.constant 0 : i32
    return %c0_i32, %arg0 : i32, i32
  }
}

</mosaic_0001>

<bundles_post_ra>
// kernel: policy_forward.1
= control target key start
LH: loop header
LB: loop body
LE: loop exit
PB: predicated region body
PF: predicated region fallthrough
CT: control target
= control target key end

     0   :  { %12 = vsyncpa [#allocation3], 0  ;;  %s553_s0 = inlined_call_operand.hbm [shape: f32[8,16], index: 0, kind: input, shape index: {}]   ;;  %s554_s1 = inlined_call_operand.vmem [shape: f32[16,128], index: 1, kind: input, shape index: {}]   ;;  %s555_s2 = inlined_call_operand.vmem [shape: f32[1,128], index: 2, kind: input, shape index: {}]   ;;  %s556_s3 = inlined_call_operand.hbm [shape: f32[128,128], index: 3, kind: input, shape index: {}]   ;;  %s557_s4 = inlined_call_operand.vmem [shape: f32[1,128], index: 4, kind: input, shape index: {}]   ;;  %s558_s5 = inlined_call_operand.hbm [shape: f32[8,128], index: 5, kind: input, shape index: {}]   ;;  %s559_s6 = inlined_call_operand.vmem [shape: f32[8,1], index: 6, kind: input, shape index: {}]   ;;  %s560_s7 = inlined_call_operand.vmem [shape: f32[8,8], index: 7, kind: output, shape index: {}]  }
   0x1   :  { %13 = vsyncpa [#allocation5], 0  ;;  %s475_s24 = smov [#allocation4]  }
   0x2   :  { %s33_s25 = sshll.u32 %s475_s24, 4  ;;  %s34_s25 = int_to_ptr.vmem [resolvable:$true] %s33_s25 }
   0x3   :  { %s419_s26 = scalar_lea.vmem %s34_s25, 2048  ;;  %p424_p1 = scmp.lt.s32.totalorder %s34_s25, %s34_s25 }
   0x4   :  { %p420_p0 = scmp.ne.s32.totalorder %s34_s25, %s419_s26  ;;  %p425_p2 = scmp.lt.s32.totalorder %s419_s26, %s419_s26 }
   0x6   :  { %p426_p3 = por %p425_p2, %p424_p1 }
   0x8   :  { %p427_p4 = pnand %p426_p3, %p420_p0 }
   0xa   :  { %430 = shalt.err (!%p427_p4)
}
   0xb   :  { %s476_s27 = smov 128   ;;  %s477_s28 = smov 8  }
   0xc   :  { %39 = dma.hbm_to_vmem [thread:$0]  %s556_s3, 2048, %s34_s25, [#allocation5], %s476_s27, %s476_s27, %s477_s28  }
   0xd   :  { %s478_s8 = smov [#allocation2]   ;;  %s479_s10 = smov [#allocation6]  }
   0xe   :  { %s20_s9 = sshll.u32 %s478_s8, 4  ;;  %s48_s11 = sshll.u32 %s479_s10, 4  ;;  %s21_s9 = int_to_ptr.vmem [resolvable:$true] %s20_s9  ;;  %s49_s11 = int_to_ptr.vmem [resolvable:$true] %s48_s11 }
   0xf   :  { %s439_s12 = scalar_lea.vmem %s21_s9, 128  ;;  %p444_p6 = scmp.lt.s32.totalorder %s21_s9, %s21_s9 }
  0x10   :  { %p440_p5 = scmp.ne.s32.totalorder %s21_s9, %s439_s12  ;;  %p445_p7 = scmp.lt.s32.totalorder %s439_s12, %s439_s12 }
  0x12   :  { %p446_p8 = por %p445_p7, %p444_p6 }
  0x14   :  { %p447_p9 = pnand %p446_p8, %p440_p5 }
  0x16   :  { %450 = shalt.err (!%p447_p9)
}
  0x17   :  { %23 = dma.hbm_to_vmem [thread:$0]  %s553_s0, 128, %s21_s9, [#allocation3]  }
  0x18   :  { %s459_s15 = scalar_lea.vmem %s49_s11, 128  ;;  %p464_p11 = scmp.lt.s32.totalorder %s49_s11, %s49_s11 }
  0x19   :  { %p460_p10 = scmp.ne.s32.totalorder %s49_s11, %s459_s15  ;;  %p465_p12 = scmp.lt.s32.totalorder %s459_s15, %s459_s15 }
  0x1b   :  { %p466_p13 = por %p465_p12, %p464_p11 }
  0x1d   :  { %p467_p0 = pnand %p466_p13, %p460_p10 }
  0x1f   :  { %470 = shalt.err (!%p467_p0)
}
  0x20   :  { %51 = dma.hbm_to_vmem [thread:$0]  %s558_s5, 128, %s49_s11, [#allocation5]  }
  0x21   :  { %471 = dma.done.wait [#allocation3], 128  }
  0x22   :  { %472 = vsyncadd [#allocation3], 4294967168 }
  0x23   :  { %473 = dma.done.wait [#allocation5], 2176  }
  0x24   :  { %474 = vsyncadd [#allocation5], 4294965120  ;;  %v480_v0 = vmov 0.0   ;;  %vm481_vm0 = vmmov 0   ;;  %v65_v1 = vld [vmem:[%s554_s1 + $0x8] sm:$0xff]  ;;  %v64_v2 = vld [vmem:[%s554_s1] sm:$0xff] }
  0x25   :  { %353 = vmatprep.subr.mxu0 %v480_v0  ;;  %357 = vmatprep.mubr.msk.f32.mxu0 %vm481_vm0, %v480_v0  ;;  %v63_v3 = vld [vmem:[#allocation2] sm:$0xff]  ;;  %vm73_vm1 = vcmask 130048   ;;  %v162_v5 = vld [vmem:[#allocation4 + $0x70] sm:$0xff]  ;;  %v161_v6 = vld [vmem:[#allocation4 + $0x68] sm:$0xff]  ;;  %v482_v26 = vmov 0   ;;  %vm320_vm2 = vcmask 64512  }
  0x26   :  { %360 = vmatprep.subr.mxu1 %v480_v0  ;;  %392 = vmatprep.mubr.msk.f32.mxu1 %vm481_vm0, %v480_v0  ;;  %v163_v4 = vld [vmem:[#allocation4 + $0x78] sm:$0xff]  ;;  %v160_v7 = vld [vmem:[#allocation4 + $0x60] sm:$0xff]  ;;  %v158_v9 = vld [vmem:[#allocation4 + $0x50] sm:$0xff] }
  0x27   :  { %354 = vmatpush3.msra.mxu0 %v65_v1  ;;  %361 = vmatpush3.msra.mxu1 %v163_v4  ;;  %v159_v8 = vld [vmem:[#allocation4 + $0x58] sm:$0xff]  ;;  %v157_v10 = vld [vmem:[#allocation4 + $0x48] sm:$0xff]  ;;  %v156_v11 = vld [vmem:[#allocation4 + $0x40] sm:$0xff] }
  0x28   :  { %355 = vmatprep.subr.mxu0 %v480_v0  ;;  %362 = vmatprep.subr.mxu1 %v480_v0  ;;  %v155_v12 = vld [vmem:[#allocation4 + $0x38] sm:$0xff]  ;;  %v154_v13 = vld [vmem:[#allocation4 + $0x30] sm:$0xff]  ;;  %v153_v14 = vld [vmem:[#allocation4 + $0x28] sm:$0xff] }
  0x29   :  { %356 = vmatpush3.msra.mxu0 %v64_v2  ;;  %363 = vmatpush3.msra.mxu1 %v162_v5  ;;  %v152_v15 = vld [vmem:[#allocation4 + $0x20] sm:$0xff]  ;;  %v151_v16 = vld [vmem:[#allocation4 + $0x18] sm:$0xff]  ;;  %v150_v17 = vld [vmem:[#allocation4 + $0x10] sm:$0xff] }
  0x2a   :  { %358 = vmatmul.mubr.msk.f32.vlgmr.msra.gmra.mxu0 %vm73_vm1, %v63_v3  ;;  %364 = vmatprep.subr.mxu1 %v480_v0  ;;  %v149_v18 = vld [vmem:[#allocation4 + $0x8] sm:$0xff]  ;;  %v148_v19 = vld [vmem:[#allocation4] sm:$0xff]  ;;  %v328_v20 = vld [vmem:[%s555_s2] ss:$0 sm:$0xff] }
  0x2b   :  { %395 = vmatprep.subr.mxu0 %v480_v0  ;;  %365 = vmatpush3.msra.mxu1 %v161_v6  ;;  %v243_v25 = vld [vmem:[%s559_s6] sm:$0xff]  ;;  %v242_v32 = vld [vmem:[#allocation6] sm:$0xff] }
  0x2c   :  { %397 = vmatprep.mubr.msk.f32.mxu0 %vm481_vm0, %v480_v0  ;;  %366 = vmatprep.subr.mxu1 %v480_v0  ;;  %v330_v27 = vld [vmem:[%s557_s4] ss:$0 sm:$0xff] }
  0x2d   :  { %367 = vmatpush3.msra.mxu1 %v160_v7  ;;  %408 = vset.pattern.permute.xlu0 %v482_v26 }
  0x2e   :  { %368 = vmatprep.subr.mxu1 %v480_v0  ;;  %246 = vperm.xlu0 %408, %v243_v25  }
  0x2f   :  { %369 = vmatpush3.msra.mxu1 %v159_v8 }
  0x30   :  { %370 = vmatprep.subr.mxu1 %v480_v0 }
  0x31   :  { %371 = vmatpush3.msra.mxu1 %v158_v9 }
  0x32   :  { %372 = vmatprep.subr.mxu1 %v480_v0 }
  0x33   :  { %373 = vmatpush3.msra.mxu1 %v157_v10 }
  0x34   :  { %374 = vmatprep.subr.mxu1 %v480_v0 }
  0x35   :  { %375 = vmatpush3.msra.mxu1 %v156_v11 }
  0x36   :  { %376 = vmatprep.subr.mxu1 %v480_v0 }
  0x37   :  { %377 = vmatpush3.msra.mxu1 %v155_v12 }
  0x38   :  { %378 = vmatprep.subr.mxu1 %v480_v0 }
  0x39   :  { %379 = vmatpush3.msra.mxu1 %v154_v13 }
  0x3a   :  { %380 = vmatprep.subr.mxu1 %v480_v0 }
  0x3b   :  { %381 = vmatpush3.msra.mxu1 %v153_v14 }
  0x3c   :  { %382 = vmatprep.subr.mxu1 %v480_v0 }
  0x3d   :  { %383 = vmatpush3.msra.mxu1 %v152_v15 }
  0x3e   :  { %384 = vmatprep.subr.mxu1 %v480_v0 }
  0x3f   :  { %385 = vmatpush3.msra.mxu1 %v151_v16 }
  0x40   :  { %386 = vmatprep.subr.mxu1 %v480_v0 }
  0x41   :  { %387 = vmatpush3.msra.mxu1 %v150_v17 }
  0x42   :  { %388 = vmatprep.subr.mxu1 %v480_v0 }
  0x43   :  { %389 = vmatpush3.msra.mxu1 %v149_v18 }
  0x44   :  { %390 = vmatprep.subr.mxu1 %v480_v0 }
  0x45   :  { %391 = vmatpush3.msra.mxu1 %v148_v19 }
  0xa9   :  { %v247_v33 = vpop.permute.xlu0 %246 }
  0xea   :  { %v143_v21 = vpop.f32.mrf.mxu0 }
  0xeb   :  { %v144_v22 = vadd.f32 %v328_v20, %v143_v21 }
  0xec   :  { %v359_v23 = vpop.f32.mrf.mxu0 }
  0xed   :  { %v147_v24 = vmax.f32 %v144_v22, 0.0 }
  0xef   :  { %393 = vmatmul.mubr.f32.vlgmr.msra.gmra.mxu1 %v147_v24 }
 0x1af   :  { %v237_v28 = vpop.f32.mrf.mxu1 }
 0x1b0   :  { %v238_v29 = vadd.f32 %v330_v27, %v237_v28 }
 0x1b1   :  { %v394_v30 = vpop.f32.mrf.mxu1 }
 0x1b2   :  { %v241_v31 = vmax.f32 %v238_v29, 0.0 }
 0x1b4   :  { %396 = vmatpush3.xpose.msra.mxu0 %v241_v31 }
 0x1b7   :  { %398 = vmatmul.mubr.f32.vlgmr.msra.gmra.mxu0 %v242_v32 }
 0x277   :  { %v315_v34 = vpop.f32.mrf.mxu0 }
 0x278   :  { %v316_v35 = vadd.f32 %v315_v34, %v247_v33 }
 0x279   :  { %v399_v36 = vpop.f32.mrf.mxu0 }
 0x27a   :  { %409 = vtanh.f32 %v316_v35 }
 0x287   :  { %v410_v37 = vpop.eup %409 }
 0x288   :  { %321 = vst.msk [vmem:[%s560_s7] sm:$0xff] %vm320_vm2, %v410_v37 }
 0x289   :  { %326 = vsyncpa [#allocation3], 1 }
 0x28a   :  { %327 = vsyncpa [#allocation5], 1 }

</bundles_post_ra>
